<compile_context>
chip_gen: v5e
topology: v5e:2x2
jax: 0.10.0
libtpu: 0.0.40
codegen_flags: <defaults>
</compile_context>

<pallas_src>
import functools

import jax
import jax.numpy as jnp
from jax.experimental import pallas as pl
from jax.experimental.pallas import tpu as pltpu


def _round_up(v, m):
    return ((v + m - 1) // m) * m


def _ssp(x):
    # shifted softplus  log(0.5*exp(x)+0.5) == softplus(x) - log(2),
    # written in the overflow-safe form max(x,0) + log(1+exp(-|x|)) - log(2).
    return (jnp.maximum(x, 0.0)
            + jnp.log(1.0 + jnp.exp(-jnp.abs(x)))
            - jnp.log(2.0))


def atomistic_kernel(x_ref, mask_ref,
                     w1_ref, b1_ref, w2_ref, b2_ref,
                     w3_ref, b3_ref, w4_ref, b4_ref,
                     rep_ref, yi_ref):
    bf = jnp.bfloat16
    x = x_ref[...].astype(bf)                                   # (TM, F) bf16

    # --- representation block ('1p'): per-atom MLP  F -> H (ReLU) -> H -------
    h = jnp.maximum(
        jnp.dot(x, w1_ref[...], preferred_element_type=jnp.float32)
        + b1_ref[...], 0.0)                                     # (TM, H) f32
    rep = (jnp.dot(h.astype(bf), w2_ref[...],
                   preferred_element_type=jnp.float32)
           + b2_ref[...])                                       # (TM, H) f32
    rep_ref[...] = rep.astype(rep_ref.dtype)                    # (TM, H) store

    # --- Atomwise head: H -> H2 with shifted softplus -------------------------
    h2 = _ssp(jnp.dot(rep.astype(bf), w3_ref[...],
                      preferred_element_type=jnp.float32)
              + b3_ref[...])                                    # (TM, H2) f32

    # --- H2 -> 1 projection, atom axis placed in lanes -------------------------
    # Contract w4 (1, H2) against h2's feature axis so the result is (1, TM):
    # the yi writeback is one dense vst instead of TM lane-1 masked stores.
    yi_row = jax.lax.dot_general(
        w4_ref[...], h2.astype(bf), (((1,), (1,)), ((), ())),
        preferred_element_type=jnp.float32) + b4_ref[0, 0]      # (1, TM)
    yi_ref[...] = yi_row * mask_ref[...]                        # zero padded atoms


def atomistic_model(x, atom_mask, params, *, tm=1024, rep_dtype=jnp.bfloat16):
    """x: (B, N, F); atom_mask: (B, N, 1) float32; params: 8 weight/bias arrays."""
    B, N, F = x.shape
    w1, b1, w2, b2, w3, b3, w4, b4 = params
    H = w1.shape[1]
    H2 = w3.shape[1]
    M = B * N

    bf = jnp.bfloat16
    # Weight casts are tiny (few KiB); the big activation is cast in-kernel.
    w1c, w2c, w3c = w1.astype(bf), w2.astype(bf), w3.astype(bf)
    w4c = w4.reshape(1, H2).astype(bf)
    b1c, b2c, b3c = b1.reshape(1, H), b2.reshape(1, H), b3.reshape(1, H2)
    b4c = b4.reshape(1, 1)

    x_flat = x.reshape(M, F)                 # contiguous reshape, no HBM pass
    mask_row = atom_mask.reshape(1, M)       # lane-dense mask layout

    # Row tile: a multiple of 128 (lane-dense yi/mask blocks) unless a single
    # full-array block suffices; capped so large M yields >=2 tiles (both v7x
    # TensorCores busy).  The last grid block may be ragged (cdiv grid).
    if M <= 128:
        tm = M
    else:
        tm = min(int(tm), _round_up(pl.cdiv(M, 2), 128))
        tm = max(128, (tm // 128) * 128)
    G = pl.cdiv(M, tm)

    def _w(shape):
        return pl.BlockSpec(shape, lambda g, _s=len(shape): (0,) * _s)

    grid_spec = pltpu.PrefetchScalarGridSpec(
        num_scalar_prefetch=0,
        grid=(G,),
        in_specs=[
            pl.BlockSpec((tm, F), lambda g: (g, 0)),            # x rows
            pl.BlockSpec((1, tm), lambda g: (0, g)),            # mask (lane-dense)
            _w((F, H)), _w((1, H)),                             # representation layer 1
            _w((H, H)), _w((1, H)),                             # representation layer 2
            _w((H, H2)), _w((1, H2)),                           # Atomwise layer 1
            _w((1, H2)),                                        # Atomwise layer 2 (row form)
            pl.BlockSpec(memory_space=pltpu.MemorySpace.SMEM),  # b4 scalar
        ],
        out_specs=[
            pl.BlockSpec((tm, H), lambda g: (g, 0)),            # atomic environments
            pl.BlockSpec((1, tm), lambda g: (0, g)),            # per-atom yi (lane-dense)
        ],
    )

    flops = 2 * M * (F * H + H * H + H * H2 + H2)
    transcendentals = 2 * M * H2                                 # exp + log in ssp
    bytes_accessed = int(
        M * F * jnp.dtype(x.dtype).itemsize                      # x read
        + M * H * jnp.dtype(rep_dtype).itemsize                  # rep write
        + M * 4 * 2                                              # yi write + mask read
        + sum(int(p.size) * 2 for p in (w1c, w2c, w3c, w4c))
        + sum(int(p.size) * 4 for p in (b1c, b2c, b3c, b4c)))

    rep_flat, yi_row = pl.pallas_call(
        atomistic_kernel,
        out_shape=(
            jax.ShapeDtypeStruct((M, H), rep_dtype),
            jax.ShapeDtypeStruct((1, M), jnp.float32),
        ),
        grid_spec=grid_spec,
        compiler_params=pltpu.CompilerParams(
            dimension_semantics=("parallel",)),
        cost_estimate=pl.CostEstimate(
            flops=flops,
            transcendentals=transcendentals,
            bytes_accessed=bytes_accessed),
    )(x_flat, mask_row,
      w1c, b1c, w2c, b2c, w3c, b3c, w4c, b4c)

    # Reshape back to logical shapes; pool per-atom contributions per molecule.
    rep = rep_flat.reshape(B, N, H)
    yi = yi_row.reshape(B, N, 1)
    y = jnp.sum(yi, axis=1)                                      # (B, 1)

    # dict of property predictions, like AtomisticModel.forward
    return {"representation": rep, "yi": yi, "y": y}


def reference(x, atom_mask, params):
    """Pure-JAX reference mirroring the kernel's bf16-input / f32-accum numerics."""
    bf = jnp.bfloat16
    w1, b1, w2, b2, w3, b3, w4, b4 = params

    def mm(a, b):
        return jnp.dot(a.astype(bf), b.astype(bf),
                       preferred_element_type=jnp.float32)

    h = jnp.maximum(mm(x, w1) + b1, 0.0)
    rep = mm(h, w2) + b2
    h2 = _ssp(mm(rep, w3) + b3)
    yi = (mm(h2, w4) + b4) * atom_mask
    y = jnp.sum(yi, axis=1)
    return rep, yi, y


if __name__ == "__main__":
    # Non-128-aligned feature sizes and an M that is not a multiple of the row
    # tile, to exercise the unpadded-weights path and the ragged last block.
    B, N, F, H, H2 = 5, 60, 30, 32, 16      # M = 300 -> 3 tiles at tm=128

    key = jax.random.PRNGKey(0)
    ks = jax.random.split(key, 10)
    x = jax.random.normal(ks[0], (B, N, F), dtype=jnp.float32)
    atom_mask = jnp.ones((B, N, 1), dtype=jnp.float32)
    atom_mask = atom_mask.at[1, -3:, 0].set(0.0)   # padding atoms in molecule 1
    atom_mask = atom_mask.at[3, -1:, 0].set(0.0)   # padding atom in molecule 3

    def init(k, shape, scale=0.1):
        return scale * jax.random.normal(k, shape, dtype=jnp.float32)

    params = (
        init(ks[1], (F, H)), init(ks[2], (1, H)),
        init(ks[3], (H, H)), init(ks[4], (1, H)),
        init(ks[5], (H, H2)), init(ks[6], (1, H2)),
        init(ks[7], (H2, 1)), init(ks[8], (1, 1)),
    )

    fwd = jax.jit(functools.partial(atomistic_model, tm=128))
    outs = fwd(x, atom_mask, params)
    jax.block_until_ready(outs)

    rep_ref, yi_ref, y_ref = reference(x, atom_mask, params)
    assert jnp.allclose(outs["representation"].astype(jnp.float32), rep_ref,
                        atol=1e-2, rtol=1e-2)
    assert jnp.allclose(outs["yi"], yi_ref, atol=1e-2, rtol=1e-2)
    assert jnp.allclose(outs["y"], y_ref, atol=1e-2, rtol=1e-2)

    print("KERNEL_OK")
</pallas_src>

<mosaic_0001>
module attributes {stable_mosaic.version = 11 : i64} {
  func.func @atomistic_kernel(%arg0: i32, %arg1: memref<128x30xf32, #tpu.memory_space<vmem>>, %arg2: memref<1x128xf32, #tpu.memory_space<vmem>>, %arg3: memref<30x32xbf16, #tpu.memory_space<vmem>>, %arg4: memref<1x32xf32, #tpu.memory_space<vmem>>, %arg5: memref<32x32xbf16, #tpu.memory_space<vmem>>, %arg6: memref<1x32xf32, #tpu.memory_space<vmem>>, %arg7: memref<32x16xbf16, #tpu.memory_space<vmem>>, %arg8: memref<1x16xf32, #tpu.memory_space<vmem>>, %arg9: memref<1x16xbf16, #tpu.memory_space<vmem>>, %arg10: memref<1x1xf32, #tpu.memory_space<smem>>, %arg11: memref<128x32xbf16, #tpu.memory_space<vmem>>, %arg12: memref<1x128xf32, #tpu.memory_space<vmem>>) attributes {dimension_semantics = [#tpu.dimension_semantics<parallel>], iteration_bounds = array<i64: 3>, scalar_prefetch = 0 : i64, scratch_operands = 0 : i64, tpu.core_type = #tpu.core_type<tc>, window_params = [{transform_indices = @transform_0, window_bounds = array<i64: 128, 30>}, {transform_indices = @transform_1, window_bounds = array<i64: 1, 128>}, {pipeline_mode = #tpu.pipeline_mode<synchronous>, transform_indices = @transform_2, window_bounds = array<i64: 30, 32>}, {pipeline_mode = #tpu.pipeline_mode<synchronous>, transform_indices = @transform_3, window_bounds = array<i64: 1, 32>}, {pipeline_mode = #tpu.pipeline_mode<synchronous>, transform_indices = @transform_4, window_bounds = array<i64: 32, 32>}, {pipeline_mode = #tpu.pipeline_mode<synchronous>, transform_indices = @transform_5, window_bounds = array<i64: 1, 32>}, {pipeline_mode = #tpu.pipeline_mode<synchronous>, transform_indices = @transform_6, window_bounds = array<i64: 32, 16>}, {pipeline_mode = #tpu.pipeline_mode<synchronous>, transform_indices = @transform_7, window_bounds = array<i64: 1, 16>}, {pipeline_mode = #tpu.pipeline_mode<synchronous>, transform_indices = @transform_8, window_bounds = array<i64: 1, 16>}, {transform_indices = @transform_9, window_bounds = array<i64: 1, 1>}, {transform_indices = @transform_10, window_bounds = array<i64: 128, 32>}, {transform_indices = @transform_11, window_bounds = array<i64: 1, 128>}]} {
    %c0 = arith.constant 0 : index
    %c0_0 = arith.constant 0 : index
    %0 = vector.load %arg1[%c0, %c0_0] : memref<128x30xf32, #tpu.memory_space<vmem>>, vector<128x30xf32>
    %1 = arith.truncf %0 : vector<128x30xf32> to vector<128x30xbf16>
    %c0_1 = arith.constant 0 : index
    %c0_2 = arith.constant 0 : index
    %2 = vector.load %arg3[%c0_1, %c0_2] : memref<30x32xbf16, #tpu.memory_space<vmem>>, vector<30x32xbf16>
    %cst = arith.constant dense<0.000000e+00> : vector<128x32xf32>
    %3 = tpu.matmul %1, %2, %cst {dimension_numbers = #tpu.dot_dimension_numbers<[1], [0], [0], [1], [0, 0, 1, 1], [], []>} : vector<128x30xbf16>, vector<30x32xbf16>, vector<128x32xf32> -> vector<128x32xf32>
    %c0_3 = arith.constant 0 : index
    %c0_4 = arith.constant 0 : index
    %4 = vector.load %arg4[%c0_3, %c0_4] : memref<1x32xf32, #tpu.memory_space<vmem>>, vector<1x32xf32>
    %5 = vector.broadcast %4 : vector<1x32xf32> to vector<128x32xf32>
    %6 = arith.addf %3, %5 : vector<128x32xf32>
    %cst_5 = arith.constant 0.000000e+00 : f32
    %7 = vector.broadcast %cst_5 : f32 to vector<128x32xf32>
    %8 = arith.maximumf %6, %7 : vector<128x32xf32>
    %9 = arith.truncf %8 : vector<128x32xf32> to vector<128x32xbf16>
    %c0_6 = arith.constant 0 : index
    %c0_7 = arith.constant 0 : index
    %10 = vector.load %arg5[%c0_6, %c0_7] : memref<32x32xbf16, #tpu.memory_space<vmem>>, vector<32x32xbf16>
    %cst_8 = arith.constant dense<0.000000e+00> : vector<128x32xf32>
    %11 = tpu.matmul %9, %10, %cst_8 {dimension_numbers = #tpu.dot_dimension_numbers<[1], [0], [0], [1], [0, 0, 1, 1], [], []>} : vector<128x32xbf16>, vector<32x32xbf16>, vector<128x32xf32> -> vector<128x32xf32>
    %c0_9 = arith.constant 0 : index
    %c0_10 = arith.constant 0 : index
    %12 = vector.load %arg6[%c0_9, %c0_10] : memref<1x32xf32, #tpu.memory_space<vmem>>, vector<1x32xf32>
    %13 = vector.broadcast %12 : vector<1x32xf32> to vector<128x32xf32>
    %14 = arith.addf %11, %13 : vector<128x32xf32>
    %15 = arith.truncf %14 : vector<128x32xf32> to vector<128x32xbf16>
    %c0_11 = arith.constant 0 : index
    %c0_12 = arith.constant 0 : index
    %16 = vector.load %arg11[%c0_11, %c0_12] : memref<128x32xbf16, #tpu.memory_space<vmem>>, vector<128x32xbf16>
    tpu.vector_store %arg11[%c0_11, %c0_12], %15 {strides = array<i32>} : memref<128x32xbf16, #tpu.memory_space<vmem>>, vector<128x32xbf16>,
    %17 = arith.truncf %14 : vector<128x32xf32> to vector<128x32xbf16>
    %c0_13 = arith.constant 0 : index
    %c0_14 = arith.constant 0 : index
    %18 = vector.load %arg7[%c0_13, %c0_14] : memref<32x16xbf16, #tpu.memory_space<vmem>>, vector<32x16xbf16>
    %cst_15 = arith.constant dense<0.000000e+00> : vector<128x16xf32>
    %19 = tpu.matmul %17, %18, %cst_15 {dimension_numbers = #tpu.dot_dimension_numbers<[1], [0], [0], [1], [0, 0, 1, 1], [], []>} : vector<128x32xbf16>, vector<32x16xbf16>, vector<128x16xf32> -> vector<128x16xf32>
    %c0_16 = arith.constant 0 : index
    %c0_17 = arith.constant 0 : index
    %20 = vector.load %arg8[%c0_16, %c0_17] : memref<1x16xf32, #tpu.memory_space<vmem>>, vector<1x16xf32>
    %21 = vector.broadcast %20 : vector<1x16xf32> to vector<128x16xf32>
    %22 = arith.addf %19, %21 : vector<128x16xf32>
    %cst_18 = arith.constant 0.000000e+00 : f32
    %23 = vector.broadcast %cst_18 : f32 to vector<128x16xf32>
    %24 = arith.maximumf %22, %23 : vector<128x16xf32>
    %25 = math.absf %22 : vector<128x16xf32>
    %cst_19 = arith.constant 0.000000e+00 : f32
    %26 = vector.broadcast %cst_19 : f32 to vector<128x16xf32>
    %27 = arith.subf %26, %25 : vector<128x16xf32>
    %28 = math.exp %27 : vector<128x16xf32>
    %cst_20 = arith.constant 1.000000e+00 : f32
    %29 = vector.broadcast %cst_20 : f32 to vector<128x16xf32>
    %30 = arith.addf %29, %28 : vector<128x16xf32>
    %31 = math.log %30 : vector<128x16xf32>
    %32 = arith.addf %24, %31 : vector<128x16xf32>
    %cst_21 = arith.constant 2.000000e+00 : f32
    %33 = math.log %cst_21 : f32
    %34 = vector.broadcast %33 : f32 to vector<128x16xf32>
    %35 = arith.subf %32, %34 : vector<128x16xf32>
    %c0_22 = arith.constant 0 : index
    %c0_23 = arith.constant 0 : index
    %36 = vector.load %arg9[%c0_22, %c0_23] : memref<1x16xbf16, #tpu.memory_space<vmem>>, vector<1x16xbf16>
    %37 = arith.truncf %35 : vector<128x16xf32> to vector<128x16xbf16>
    %cst_24 = arith.constant dense<0.000000e+00> : vector<1x128xf32>
    %38 = tpu.matmul %36, %37, %cst_24 {dimension_numbers = #tpu.dot_dimension_numbers<[1], [1], [0], [0], [0, 0, 1, 0], [], []>} : vector<1x16xbf16>, vector<128x16xbf16>, vector<1x128xf32> -> vector<1x128xf32>
    %c0_25 = arith.constant 0 : index
    %c0_26 = arith.constant 0 : index
    %39 = memref.load %arg10[%c0_25, %c0_26] : memref<1x1xf32, #tpu.memory_space<smem>>
    %40 = vector.broadcast %39 : f32 to vector<1x128xf32>
    %41 = arith.addf %38, %40 : vector<1x128xf32>
    %c0_27 = arith.constant 0 : index
    %c0_28 = arith.constant 0 : index
    %42 = vector.load %arg2[%c0_27, %c0_28] : memref<1x128xf32, #tpu.memory_space<vmem>>, vector<1x128xf32>
    %43 = arith.mulf %41, %42 : vector<1x128xf32>
    %c0_29 = arith.constant 0 : index
    %c0_30 = arith.constant 0 : index
    %44 = vector.load %arg12[%c0_29, %c0_30] : memref<1x128xf32, #tpu.memory_space<vmem>>, vector<1x128xf32>
    tpu.vector_store %arg12[%c0_29, %c0_30], %43 {strides = array<i32>} : memref<1x128xf32, #tpu.memory_space<vmem>>, vector<1x128xf32>,
    return
  }
  func.func @transform_0(%arg0: i32) -> (i32, i32) {
    %c0_i32 = arith.constant 0 : i32
    %c0_i32_0 = arith.constant 0 : i32
    return %arg0, %c0_i32 : i32, i32
  }
  func.func @transform_1(%arg0: i32) -> (i32, i32) {
    %c0_i32 = arith.constant 0 : i32
    %c0_i32_0 = arith.constant 0 : i32
    return %c0_i32, %arg0 : i32, i32
  }
  func.func @transform_2(%arg0: i32) -> (i32, i32) {
    %c0_i32 = arith.constant 0 : i32
    %c0_i32_0 = arith.constant 0 : i32
    %c0_i32_1 = arith.constant 0 : i32
    return %c0_i32, %c0_i32_0 : i32, i32
  }
  func.func @transform_3(%arg0: i32) -> (i32, i32) {
    %c0_i32 = arith.constant 0 : i32
    %c0_i32_0 = arith.constant 0 : i32
    %c0_i32_1 = arith.constant 0 : i32
    return %c0_i32, %c0_i32_0 : i32, i32
  }
  func.func @transform_4(%arg0: i32) -> (i32, i32) {
    %c0_i32 = arith.constant 0 : i32
    %c0_i32_0 = arith.constant 0 : i32
    %c0_i32_1 = arith.constant 0 : i32
    return %c0_i32, %c0_i32_0 : i32, i32
  }
  func.func @transform_5(%arg0: i32) -> (i32, i32) {
    %c0_i32 = arith.constant 0 : i32
    %c0_i32_0 = arith.constant 0 : i32
    %c0_i32_1 = arith.constant 0 : i32
    return %c0_i32, %c0_i32_0 : i32, i32
  }
  func.func @transform_6(%arg0: i32) -> (i32, i32) {
    %c0_i32 = arith.constant 0 : i32
    %c0_i32_0 = arith.constant 0 : i32
    %c0_i32_1 = arith.constant 0 : i32
    return %c0_i32, %c0_i32_0 : i32, i32
  }
  func.func @transform_7(%arg0: i32) -> (i32, i32) {
    %c0_i32 = arith.constant 0 : i32
    %c0_i32_0 = arith.constant 0 : i32
    %c0_i32_1 = arith.constant 0 : i32
    return %c0_i32, %c0_i32_0 : i32, i32
  }
  func.func @transform_8(%arg0: i32) -> (i32, i32) {
    %c0_i32 = arith.constant 0 : i32
    %c0_i32_0 = arith.constant 0 : i32
    %c0_i32_1 = arith.constant 0 : i32
    return %c0_i32, %c0_i32_0 : i32, i32
  }
  func.func @transform_9(%arg0: i32) -> (i32, i32) {
    %c0_i32 = arith.constant 0 : i32
    %c0_i32_0 = arith.constant 0 : i32
    %c0_i32_1 = arith.constant 0 : i32
    return %c0_i32, %c0_i32_0 : i32, i32
  }
  func.func @transform_10(%arg0: i32) -> (i32, i32) {
    %c0_i32 = arith.constant 0 : i32
    %c0_i32_0 = arith.constant 0 : i32
    return %arg0, %c0_i32 : i32, i32
  }
  func.func @transform_11(%arg0: i32) -> (i32, i32) {
    %c0_i32 = arith.constant 0 : i32
    %c0_i32_0 = arith.constant 0 : i32
    return %c0_i32, %arg0 : i32, i32
  }
}

</mosaic_0001>

<bundles_post_ra>
// kernel: atomistic_model.1
= control target key start
LH: loop header
LB: loop body
LE: loop exit
PB: predicated region body
PF: predicated region fallthrough
CT: control target
= control target key end

     0   :  { %s2146_s0 = inlined_call_operand.vmem [shape: f32[300,30], index: 0, kind: input, shape index: {}]   ;;  %s2147_s1 = inlined_call_operand.vmem [shape: f32[1,300], index: 1, kind: input, shape index: {}]   ;;  %s2148_s2 = inlined_call_operand.vmem [shape: bf16[30,32], index: 2, kind: input, shape index: {}]   ;;  %s2149_s3 = inlined_call_operand.vmem [shape: f32[1,32], index: 3, kind: input, shape index: {}]   ;;  %s2150_s4 = inlined_call_operand.vmem [shape: bf16[32,32], index: 4, kind: input, shape index: {}]   ;;  %s2151_s5 = inlined_call_operand.vmem [shape: f32[1,32], index: 5, kind: input, shape index: {}]   ;;  %s2152_s6 = inlined_call_operand.vmem [shape: bf16[32,16], index: 6, kind: input, shape index: {}]   ;;  %s2153_s7 = inlined_call_operand.vmem [shape: f32[1,16], index: 7, kind: input, shape index: {}]   ;;  %s2154_s8 = inlined_call_operand.vmem [shape: bf16[1,16], index: 8, kind: input, shape index: {}]   ;;  %s2155_s9 = inlined_call_operand.<no memory space> [shape: f32[1,1], index: 9, kind: input, shape index: {}]   ;;  %s2156_s10 = inlined_call_operand.vmem [shape: bf16[300,32], index: 10, kind: output, shape index: {0}]   ;;  %s2157_s11 = inlined_call_operand.vmem [shape: f32[1,300], index: 11, kind: output, shape index: {1}]  }
   0x1   :  { %17 = sst [smem:[#allocation2]] %s2155_s9 }
   0x2   :  { %s1767_s19 = smov 0   ;;  %s1769_s20 = smov 0  }
   0x3   :  { %s1771_s21 = smov 0  }
   0x4 LB: > { %s1780_s9 = sadd.s32 4294967295, %s1670_s21   ;;  %s1782_s22 = sadd.s32 1, %s1670_s21   ;;  %s1670_s21 = sphi %s1771_s21, %s2166_s21   ;;  %s1666_s20 = sphi %s1769_s20, %s2165_s20   ;;  %s1662_s19 = sphi %s1767_s19, %s2164_s19  }
   0x5   : > { %s247_s23 = ssub.s32 %s1670_s21, %s1782_s22  ;;  %s250_s24 = sadd.s32 1, %s1666_s20 }
   0x6   : > { %p248_p0 = scmp.eq.s32.totalorder %s247_s23, 0  ;;  %p260_p1 = scmp.ne.s32.totalorder %s1666_s20, %s1662_s19 }
   0x7   : > { %p261_p2 = scmp.eq.s32.totalorder %s1780_s9, 2  ;;  %p1366_p3 = scmp.ge.s32.totalorder %s1670_s21, 1 }
   0x8   : > { %s1790_s25 = scalar_select %p248_p0, %s1666_s20, %s250_s24  }
   0x9   : > { %p1792_p4 = por %p261_p2, %p260_p1  ;;  %p358_p5 = scmp.lt.s32.totalorder %s1670_s21, 4 }
   0xb   : > { %p359_p6 = pnand %p1366_p3, %p358_p5 }
   0xc   : > { %s1803_s12 = sshll.u32 (!%p359_p6), %s1780_s9, 4  ;;  %s399_s17 = sand.u32 (!%p359_p6), 1, %s1662_s19  }
   0xd   : > { %362 = sbr.rel (%p359_p6) target bundleno = 847 (0x34f), region = 60  ;;  %p412_p7 = scmp.lt.s32.totalorder (!%p359_p6), %s1803_s12, 37 }
   0xe   : > { %s1367_s23 = sshll.u32 (!%p359_p6), %s399_s17, 6  ;;  %p421_p8 = scmp.lt.s32.totalorder (!%p359_p6), %s1780_s9, 2 }
   0xf   : > { %s1887_s24 = scalar_lea.vmem (!%p359_p6), [#allocation3], %s1367_s23   ;;  %s1007_s30 = sld [smem:[#allocation2]] (!%p359_p6) }
  0x12   : > { %v1376_v0 = vld [vmem:[%s2148_s2 + $0x8] sm:$0xf]  ;;  %v1453_v1 = vld [vmem:[%s2148_s2 + $0x8] sm:$0x70]  ;;  %vm501_vm0 = vcmask 1046528   ;;  %v1452_v4 = vld [vmem:[%s2148_s2] sm:$0xff] }
  0x13   : > { %v1377_v2 = vor.u32 %v1453_v1, %v1376_v0  ;;  %s413_s15 = scalar_select %p412_p7, %s1803_s12, 37  ;;  %vm476_vm1 = vcmask 244736   ;;  %v1455_v26 = vld [vmem:[%s2150_s4 + $0x8] sm:$0xff]  ;;  %v1454_v27 = vld [vmem:[%s2150_s4] sm:$0xff]  ;;  %vm598_vm2 = vcmask 261120   ;;  %vm688_vm3 = vcmask 257024  }
  0x14   : > { %629 = vmatpush.bf16.msra.mxu1 %v1455_v26  ;;  %v1848_v32 = vld [vmem:[%s2149_s3] ss:$0 sm:$0xff]  ;;  %vm1009_vm4 = vcmask 130048   ;;  %s422_s13 = scalar_select %p421_p8, %s1780_s9, 2 }
  0x15   : > { %v503_v3 = vsel %vm501_vm0, %v1377_v2, 0  ;;  %s1369_s16 = sshll.u32 %s413_s15, 3  ;;  %v1884_v26 = vld [vmem:[%s2151_s5] ss:$0 sm:$0xff]  ;;  %s1064_s23 = ssub.s32 (%p1792_p4), 38, %s1803_s12 }
  0x16   : > { %511 = vmatpush.bf16.msra.mxu0 %v503_v3  ;;  %s1813_s21 = scalar_lea.vmem %s2146_s0, %s1369_s16  ;;  %s423_s16 = scalar_lea.vmem %s2147_s1, %s422_s13 }
  0x17   : > { %v433_v5 = vld [vmem:[%s1813_s21] sm:$0xff]  ;;  %v434_v6 = vld [vmem:[%s1813_s21 + $0x8] sm:$0xff]  ;;  %v435_v8 = vld [vmem:[%s1813_s21 + $0x10] sm:$0xff]  ;;  %s1458_s19 = sshll.u32 (%p1792_p4), %s1780_s9, 6  ;;  %p1065_p9 = scmp.lt.s32.totalorder (%p1792_p4), %s1064_s23, 16 }
  0x18   : > { %v449_v7 = vpack.c.bf16 %v434_v6, %v433_v5  ;;  %v436_v9 = vld [vmem:[%s1813_s21 + $0x18] sm:$0xff]  ;;  %v437_v11 = vld [vmem:[%s1813_s21 + $0x20] sm:$0xff]  ;;  %v438_v12 = vld [vmem:[%s1813_s21 + $0x28] sm:$0xff]  ;;  %630 = vmatpush.bf16.msra.mxu1 %v1454_v27  ;;  %s2053_s29 = scalar_lea.vmem (%p1792_p4), %s2156_s10, %s1458_s19  }
  0x19   : > { %v450_v10 = vpack.c.bf16 %v436_v9, %v435_v8  ;;  %v451_v13 = vpack.c.bf16 %v438_v12, %v437_v11  ;;  %v439_v14 = vld [vmem:[%s1813_s21 + $0x30] sm:$0xff]  ;;  %v440_v15 = vld [vmem:[%s1813_s21 + $0x38] sm:$0xff]  ;;  %v441_v17 = vld [vmem:[%s1813_s21 + $0x40] sm:$0xff] }
  0x1a   : > { %512 = vmatpush.bf16.msra.mxu0 %v1452_v4  ;;  %v452_v16 = vpack.c.bf16 %v440_v15, %v439_v14  ;;  %v442_v18 = vld [vmem:[%s1813_s21 + $0x48] sm:$0xff]  ;;  %v443_v20 = vld [vmem:[%s1813_s21 + $0x50] sm:$0xff]  ;;  %v444_v21 = vld [vmem:[%s1813_s21 + $0x58] sm:$0xff] }
  0x1b   : > { %v453_v19 = vpack.c.bf16 %v442_v18, %v441_v17  ;;  %v454_v22 = vpack.c.bf16 %v444_v21, %v443_v20  ;;  %v445_v23 = vld [vmem:[%s1813_s21 + $0x60] sm:$0xff]  ;;  %v446_v24 = vld [vmem:[%s1813_s21 + $0x68] sm:$0xff]  ;;  %v447_v28 = vld [vmem:[%s1813_s21 + $0x70] sm:$0xff] }
  0x1c   : > { %v455_v25 = vpack.c.bf16 %v446_v24, %v445_v23  ;;  %v448_v29 = vld [vmem:[%s1813_s21 + $0x78] sm:$0xff]  ;;  %v1457_v18 = vld [vmem:[%s2152_s6 + $0x8] sm:$0xff]  ;;  %v1456_v21 = vld [vmem:[%s2152_s6] sm:$0xff]  ;;  %s431_s21 = scalar_lea.vmem %s2157_s11, %s422_s13 }
  0x1d   : > { %1378 = vmatmul.msk.bf16.vlgmr.msra.gmra.mxu0 %vm476_vm1, %v449_v7  ;;  %v456_v30 = vpack.c.bf16 %v448_v29, %v447_v28  ;;  %795 = vmatpush.bf16.msra.mxu2 %v1457_v18 }
  0x21   : > { %796 = vmatpush.bf16.msra.mxu2 %v1456_v21 }
  0x2d   : > { %1379 = vmatmul.msk.bf16.gmra.mxu0 %vm476_vm1, %v450_v10 }
  0x3d   : > { %1380 = vmatmul.msk.bf16.gmra.mxu0 %vm476_vm1, %v451_v13 }
  0x4d   : > { %1381 = vmatmul.msk.bf16.gmra.mxu0 %vm476_vm1, %v452_v16 }
  0x5d   : > { %1382 = vmatmul.msk.bf16.gmra.mxu0 %vm476_vm1, %v453_v19 }
  0x6d   : > { %1383 = vmatmul.msk.bf16.gmra.mxu0 %vm476_vm1, %v454_v22 }
  0x7d   : > { %1384 = vmatmul.msk.bf16.gmra.mxu0 %vm476_vm1, %v455_v25 }
  0x8d   : > { %1385 = vmatmul.msk.bf16.gmra.mxu0 %vm476_vm1, %v456_v30 }
  0x9a   : > { %v514_v31 = vpop.f32.mrf.mxu0 }
  0x9b   : > { %v515_v33 = vadd.f32 %v1848_v32, %v514_v31 }
  0x9d   : > { %v554_v36 = vmax.f32 %v515_v33, 0.0 }
  0xa2   : > { %v516_v34 = vpop.f32.mrf.mxu0 }
  0xa3   : > { %v517_v35 = vadd.f32 %v1848_v32, %v516_v34 }
  0xa5   : > { %v555_v37 = vmax.f32 %v517_v35, 0.0 }
  0xa7   : > { %v570_v38 = vpack.c.bf16 %v555_v37, %v554_v36 }
  0xa9   : > { %1394 = vmatmul.msk.bf16.vlgmr.msra.gmra.mxu1 %vm598_vm2, %v570_v38 }
  0xaa   : > { %v519_v39 = vpop.f32.mrf.mxu0 }
  0xab   : > { %v520_v40 = vadd.f32 %v1848_v32, %v519_v39 }
  0xad   : > { %v556_v43 = vmax.f32 %v520_v40, 0.0 }
  0xb2   : > { %v521_v41 = vpop.f32.mrf.mxu0 }
  0xb3   : > { %v522_v42 = vadd.f32 %v1848_v32, %v521_v41 }
  0xb5   : > { %v557_v44 = vmax.f32 %v522_v42, 0.0 }
  0xb7   : > { %v571_v45 = vpack.c.bf16 %v557_v44, %v556_v43 }
  0xb9   : > { %1395 = vmatmul.msk.bf16.gmra.mxu1 %vm598_vm2, %v571_v45 }
  0xba   : > { %v524_v46 = vpop.f32.mrf.mxu0 }
  0xbb   : > { %v525_v47 = vadd.f32 %v1848_v32, %v524_v46 }
  0xbd   : > { %v558_v50 = vmax.f32 %v525_v47, 0.0 }
  0xc2   : > { %v526_v48 = vpop.f32.mrf.mxu0 }
  0xc3   : > { %v527_v49 = vadd.f32 %v1848_v32, %v526_v48 }
  0xc5   : > { %v559_v51 = vmax.f32 %v527_v49, 0.0 }
  0xc7   : > { %v572_v52 = vpack.c.bf16 %v559_v51, %v558_v50 }
  0xc9   : > { %1396 = vmatmul.msk.bf16.gmra.mxu1 %vm598_vm2, %v572_v52 }
  0xca   : > { %v529_v53 = vpop.f32.mrf.mxu0 }
  0xcb   : > { %v530_v54 = vadd.f32 %v1848_v32, %v529_v53 }
  0xcd   : > { %v560_v57 = vmax.f32 %v530_v54, 0.0 }
  0xd2   : > { %v531_v55 = vpop.f32.mrf.mxu0 }
  0xd3   : > { %v532_v56 = vadd.f32 %v1848_v32, %v531_v55 }
  0xd5   : > { %v561_v58 = vmax.f32 %v532_v56, 0.0 }
  0xd7   : > { %v573_v59 = vpack.c.bf16 %v561_v58, %v560_v57 }
  0xd9   : > { %1397 = vmatmul.msk.bf16.gmra.mxu1 %vm598_vm2, %v573_v59 }
  0xda   : > { %v534_v60 = vpop.f32.mrf.mxu0 }
  0xdb   : > { %v535_v61 = vadd.f32 %v1848_v32, %v534_v60 }
  0xdd   : > { %v562_v0 = vmax.f32 %v535_v61, 0.0 }
  0xe2   : > { %v536_v62 = vpop.f32.mrf.mxu0 }
  0xe3   : > { %v537_v63 = vadd.f32 %v1848_v32, %v536_v62 }
  0xe5   : > { %v563_v1 = vmax.f32 %v537_v63, 0.0 }
  0xe7   : > { %v574_v2 = vpack.c.bf16 %v563_v1, %v562_v0 }
  0xe9   : > { %1398 = vmatmul.msk.bf16.gmra.mxu1 %vm598_vm2, %v574_v2 }
  0xea   : > { %v539_v3 = vpop.f32.mrf.mxu0 }
  0xeb   : > { %v540_v4 = vadd.f32 %v1848_v32, %v539_v3 }
  0xed   : > { %v564_v7 = vmax.f32 %v540_v4, 0.0 }
  0xf2   : > { %v541_v5 = vpop.f32.mrf.mxu0 }
  0xf3   : > { %v542_v6 = vadd.f32 %v1848_v32, %v541_v5 }
  0xf5   : > { %v565_v8 = vmax.f32 %v542_v6, 0.0 }
  0xf7   : > { %v575_v9 = vpack.c.bf16 %v565_v8, %v564_v7 }
  0xf9   : > { %1399 = vmatmul.msk.bf16.gmra.mxu1 %vm598_vm2, %v575_v9 }
  0xfa   : > { %v544_v10 = vpop.f32.mrf.mxu0 }
  0xfb   : > { %v545_v11 = vadd.f32 %v1848_v32, %v544_v10 }
  0xfd   : > { %v566_v14 = vmax.f32 %v545_v11, 0.0 }
 0x102   : > { %v546_v12 = vpop.f32.mrf.mxu0 }
 0x103   : > { %v547_v13 = vadd.f32 %v1848_v32, %v546_v12 }
 0x105   : > { %v567_v15 = vmax.f32 %v547_v13, 0.0 }
 0x107   : > { %v576_v16 = vpack.c.bf16 %v567_v15, %v566_v14 }
 0x109   : > { %1400 = vmatmul.msk.bf16.gmra.mxu1 %vm598_vm2, %v576_v16 }
 0x10a   : > { %v549_v17 = vpop.f32.mrf.mxu0 }
 0x10b   : > { %v550_v19 = vadd.f32 %v1848_v32, %v549_v17 }
 0x10d   : > { %v568_v23 = vmax.f32 %v550_v19, 0.0 }
 0x112   : > { %v551_v20 = vpop.f32.mrf.mxu0 }
 0x113   : > { %v552_v22 = vadd.f32 %v1848_v32, %v551_v20 }
 0x115   : > { %v569_v24 = vmax.f32 %v552_v22, 0.0 }
 0x117   : > { %v577_v25 = vpack.c.bf16 %v569_v24, %v568_v23 }
 0x119   : > { %1401 = vmatmul.msk.bf16.gmra.mxu1 %vm598_vm2, %v577_v25 }
 0x126   : > { %v632_v27 = vpop.f32.mrf.mxu1 }
 0x127   : > { %v633_v28 = vadd.f32 %v1884_v26, %v632_v27 }
 0x129   : > { %v672_v29 = vpack.c.bf16 %v633_v28, %v633_v28 }
 0x12b   : > { %689 = vst.msk [vmem:[%s1887_s24] sm:$0xf] %vm688_vm3, %v672_v29  ;;  %v729_v33 = vunpack.c.l.b16 %v672_v29 }
 0x12e   : > { %v634_v30 = vpop.f32.mrf.mxu1 }
 0x12f   : > { %v635_v31 = vadd.f32 %v1884_v26, %v634_v30 }
 0x131   : > { %v673_v32 = vpack.c.bf16 %v635_v31, %v635_v31 }
 0x133   : > { %690 = vst.msk [vmem:[%s1887_s24 + $0x4] sm:$0xf] %vm688_vm3, %v673_v32  ;;  %v730_v34 = vunpack.c.l.b16 %v673_v32 }
 0x135   : > { %v745_v35 = vpack.c.b16 %v730_v34, %v729_v33 }
 0x136   : > { %v637_v36 = vpop.f32.mrf.mxu1 }
 0x137   : > { %v638_v37 = vadd.f32 %v1884_v26, %v637_v36  ;;  %1410 = vmatmul.msk.bf16.vlgmr.msra.gmra.mxu2 %vm598_vm2, %v745_v35  ;;  %v1947_v36 = vld [vmem:[%s2153_s7] ss:$0 sm:$0xff] }
 0x139   : > { %v674_v38 = vpack.c.bf16 %v638_v37, %v638_v37 }
 0x13b   : > { %691 = vst.msk [vmem:[%s1887_s24 + $0x8] sm:$0xf] %vm688_vm3, %v674_v38  ;;  %v731_v42 = vunpack.c.l.b16 %v674_v38 }
 0x13e   : > { %v639_v39 = vpop.f32.mrf.mxu1 }
 0x13f   : > { %v640_v40 = vadd.f32 %v1884_v26, %v639_v39 }
 0x141   : > { %v675_v41 = vpack.c.bf16 %v640_v40, %v640_v40 }
 0x143   : > { %692 = vst.msk [vmem:[%s1887_s24 + $0xc] sm:$0xf] %vm688_vm3, %v675_v41  ;;  %v732_v43 = vunpack.c.l.b16 %v675_v41 }
 0x145   : > { %v746_v44 = vpack.c.b16 %v732_v43, %v731_v42 }
 0x146   : > { %v642_v45 = vpop.f32.mrf.mxu1 }
 0x147   : > { %v643_v46 = vadd.f32 %v1884_v26, %v642_v45  ;;  %1411 = vmatmul.msk.bf16.gmra.mxu2 %vm598_vm2, %v746_v44 }
 0x149   : > { %v676_v47 = vpack.c.bf16 %v643_v46, %v643_v46 }
 0x14b   : > { %693 = vst.msk [vmem:[%s1887_s24 + $0x10] sm:$0xf] %vm688_vm3, %v676_v47  ;;  %v733_v51 = vunpack.c.l.b16 %v676_v47 }
 0x14e   : > { %v644_v48 = vpop.f32.mrf.mxu1 }
 0x14f   : > { %v645_v49 = vadd.f32 %v1884_v26, %v644_v48 }
 0x151   : > { %v677_v50 = vpack.c.bf16 %v645_v49, %v645_v49 }
 0x153   : > { %694 = vst.msk [vmem:[%s1887_s24 + $0x14] sm:$0xf] %vm688_vm3, %v677_v50  ;;  %v734_v52 = vunpack.c.l.b16 %v677_v50 }
 0x155   : > { %v747_v53 = vpack.c.b16 %v734_v52, %v733_v51 }
 0x156   : > { %v647_v54 = vpop.f32.mrf.mxu1 }
 0x157   : > { %v648_v55 = vadd.f32 %v1884_v26, %v647_v54  ;;  %1412 = vmatmul.msk.bf16.gmra.mxu2 %vm598_vm2, %v747_v53 }
 0x159   : > { %v678_v56 = vpack.c.bf16 %v648_v55, %v648_v55 }
 0x15b   : > { %695 = vst.msk [vmem:[%s1887_s24 + $0x18] sm:$0xf] %vm688_vm3, %v678_v56  ;;  %v735_v60 = vunpack.c.l.b16 %v678_v56 }
 0x15e   : > { %v649_v57 = vpop.f32.mrf.mxu1 }
 0x15f   : > { %v650_v58 = vadd.f32 %v1884_v26, %v649_v57 }
 0x161   : > { %v679_v59 = vpack.c.bf16 %v650_v58, %v650_v58 }
 0x163   : > { %696 = vst.msk [vmem:[%s1887_s24 + $0x1c] sm:$0xf] %vm688_vm3, %v679_v59  ;;  %v736_v61 = vunpack.c.l.b16 %v679_v59 }
 0x165   : > { %v748_v62 = vpack.c.b16 %v736_v61, %v735_v60 }
 0x166   : > { %v652_v63 = vpop.f32.mrf.mxu1 }
 0x167   : > { %v653_v0 = vadd.f32 %v1884_v26, %v652_v63  ;;  %1413 = vmatmul.msk.bf16.gmra.mxu2 %vm598_vm2, %v748_v62 }
 0x169   : > { %v680_v1 = vpack.c.bf16 %v653_v0, %v653_v0 }
 0x16b   : > { %697 = vst.msk [vmem:[%s1887_s24 + $0x20] sm:$0xf] %vm688_vm3, %v680_v1  ;;  %v737_v5 = vunpack.c.l.b16 %v680_v1 }
 0x16e   : > { %v654_v2 = vpop.f32.mrf.mxu1 }
 0x16f   : > { %v655_v3 = vadd.f32 %v1884_v26, %v654_v2 }
 0x171   : > { %v681_v4 = vpack.c.bf16 %v655_v3, %v655_v3 }
 0x173   : > { %698 = vst.msk [vmem:[%s1887_s24 + $0x24] sm:$0xf] %vm688_vm3, %v681_v4  ;;  %v738_v6 = vunpack.c.l.b16 %v681_v4 }
 0x175   : > { %v749_v7 = vpack.c.b16 %v738_v6, %v737_v5 }
 0x176   : > { %v657_v8 = vpop.f32.mrf.mxu1 }
 0x177   : > { %v658_v9 = vadd.f32 %v1884_v26, %v657_v8  ;;  %1414 = vmatmul.msk.bf16.gmra.mxu2 %vm598_vm2, %v749_v7 }
 0x179   : > { %v682_v10 = vpack.c.bf16 %v658_v9, %v658_v9 }
 0x17b   : > { %699 = vst.msk [vmem:[%s1887_s24 + $0x28] sm:$0xf] %vm688_vm3, %v682_v10  ;;  %v739_v14 = vunpack.c.l.b16 %v682_v10 }
 0x17e   : > { %v659_v11 = vpop.f32.mrf.mxu1 }
 0x17f   : > { %v660_v12 = vadd.f32 %v1884_v26, %v659_v11 }
 0x181   : > { %v683_v13 = vpack.c.bf16 %v660_v12, %v660_v12 }
 0x183   : > { %700 = vst.msk [vmem:[%s1887_s24 + $0x2c] sm:$0xf] %vm688_vm3, %v683_v13  ;;  %v740_v15 = vunpack.c.l.b16 %v683_v13 }
 0x185   : > { %v750_v16 = vpack.c.b16 %v740_v15, %v739_v14 }
 0x186   : > { %v662_v17 = vpop.f32.mrf.mxu1 }
 0x187   : > { %v663_v18 = vadd.f32 %v1884_v26, %v662_v17  ;;  %1415 = vmatmul.msk.bf16.gmra.mxu2 %vm598_vm2, %v750_v16 }
 0x189   : > { %v684_v19 = vpack.c.bf16 %v663_v18, %v663_v18 }
 0x18b   : > { %701 = vst.msk [vmem:[%s1887_s24 + $0x30] sm:$0xf] %vm688_vm3, %v684_v19  ;;  %v741_v23 = vunpack.c.l.b16 %v684_v19 }
 0x18e   : > { %v664_v20 = vpop.f32.mrf.mxu1 }
 0x18f   : > { %v665_v21 = vadd.f32 %v1884_v26, %v664_v20 }
 0x191   : > { %v685_v22 = vpack.c.bf16 %v665_v21, %v665_v21 }
 0x193   : > { %702 = vst.msk [vmem:[%s1887_s24 + $0x34] sm:$0xf] %vm688_vm3, %v685_v22  ;;  %v742_v24 = vunpack.c.l.b16 %v685_v22 }
 0x195   : > { %v751_v25 = vpack.c.b16 %v742_v24, %v741_v23 }
 0x196   : > { %v667_v27 = vpop.f32.mrf.mxu1 }
 0x197   : > { %v668_v28 = vadd.f32 %v1884_v26, %v667_v27  ;;  %1416 = vmatmul.msk.bf16.gmra.mxu2 %vm598_vm2, %v751_v25 }
 0x199   : > { %v686_v29 = vpack.c.bf16 %v668_v28, %v668_v28 }
 0x19b   : > { %703 = vst.msk [vmem:[%s1887_s24 + $0x38] sm:$0xf] %vm688_vm3, %v686_v29  ;;  %v743_v33 = vunpack.c.l.b16 %v686_v29 }
 0x19e   : > { %v669_v30 = vpop.f32.mrf.mxu1 }
 0x19f   : > { %v670_v31 = vadd.f32 %v1884_v26, %v669_v30 }
 0x1a1   : > { %v687_v32 = vpack.c.bf16 %v670_v31, %v670_v31 }
 0x1a3   : > { %704 = vst.msk [vmem:[%s1887_s24 + $0x3c] sm:$0xf] %vm688_vm3, %v687_v32  ;;  %v744_v34 = vunpack.c.l.b16 %v687_v32 }
 0x1a5   : > { %v752_v35 = vpack.c.b16 %v744_v34, %v743_v33 }
 0x1a7   : > { %1417 = vmatmul.msk.bf16.gmra.mxu2 %vm598_vm2, %v752_v35 }
 0x1ba   : > { %v798_v37 = vpop.f32.mrf.mxu2 }
 0x1bb   : > { %v799_v38 = vadd.f32 %v1947_v36, %v798_v37 }
 0x1bd   : > { %v854_v39 = vand.u32 2147483647, %v799_v38  ;;  %v838_v62 = vmax.f32 %v799_v38, 0.0 }
 0x1bf   : > { %v870_v40 = vsub.f32 0.0, %v854_v39 }
 0x1c1   : > { %v886_v41 = vmul.f32 1.442695, %v870_v40 }
 0x1c2   : > { %v800_v26 = vpop.f32.mrf.mxu2 }
 0x1c3   : > { %1552 = vpow2.f32 %v886_v41  ;;  %v801_v42 = vadd.f32 %v1947_v36, %v800_v26 }
 0x1c5   : > { %v855_v43 = vand.u32 2147483647, %v801_v42  ;;  %v839_v1 = vmax.f32 %v801_v42, 0.0 }
 0x1c7   : > { %v871_v44 = vsub.f32 0.0, %v855_v43 }
 0x1c9   : > { %v1553_v45 = vpop.eup %1552  ;;  %v888_v46 = vmul.f32 1.442695, %v871_v44 }
 0x1ca   : > { %v918_v47 = vadd.f32 1.0, %v1553_v45  ;;  %v803_v48 = vpop.f32.mrf.mxu2 }
 0x1cb   : > { %1554 = vpow2.f32 %v888_v46  ;;  %v804_v49 = vadd.f32 %v1947_v36, %v803_v48 }
 0x1cc   : > { %1556 = vlog2.f32 %v918_v47 }
 0x1cd   : > { %v856_v50 = vand.u32 2147483647, %v804_v49  ;;  %v840_v23 = vmax.f32 %v804_v49, 0.0 }
 0x1cf   : > { %v872_v51 = vsub.f32 0.0, %v856_v50 }
 0x1d1   : > { %v1555_v52 = vpop.eup %1554  ;;  %v890_v53 = vmul.f32 1.442695, %v872_v51 }
 0x1d2   : > { %v919_v54 = vadd.f32 1.0, %v1555_v52  ;;  %v805_v55 = vpop.f32.mrf.mxu2  ;;  %v1557_v57 = vpop.eup %1556 }
 0x1d3   : > { %1558 = vpow2.f32 %v890_v53  ;;  %v806_v56 = vadd.f32 %v1947_v36, %v805_v55  ;;  %v935_v59 = vmul.f32 0.6931472, %v1557_v57 }
 0x1d4   : > { %1560 = vlog2.f32 %v919_v54 }
 0x1d5   : > { %v857_v58 = vand.u32 2147483647, %v806_v56  ;;  %v966_v4 = vadd.f32 %v935_v59, %v838_v62  ;;  %v841_v27 = vmax.f32 %v806_v56, 0.0 }
 0x1d7   : > { %v873_v60 = vsub.f32 0.0, %v857_v58  ;;  %v1954_v10 = vadd.f32 -0.6931472, %v966_v4 }
 0x1d9   : > { %v1559_v61 = vpop.eup %1558  ;;  %v892_v63 = vmul.f32 1.442695, %v873_v60 }
 0x1da   : > { %v1561_v0 = vpop.eup %1560  ;;  %v920_v2 = vadd.f32 1.0, %v1559_v61  ;;  %v808_v3 = vpop.f32.mrf.mxu2 }
 0x1db   : > { %v937_v5 = vmul.f32 0.6931472, %v1561_v0  ;;  %1562 = vpow2.f32 %v892_v63  ;;  %v809_v6 = vadd.f32 %v1947_v36, %v808_v3 }
 0x1dc   : > { %1564 = vlog2.f32 %v920_v2 }
 0x1dd   : > { %v967_v7 = vadd.f32 %v937_v5, %v839_v1  ;;  %v858_v8 = vand.u32 2147483647, %v809_v6  ;;  %v842_v49 = vmax.f32 %v809_v6, 0.0 }
 0x1df   : > { %v874_v9 = vsub.f32 0.0, %v858_v8  ;;  %v1956_v11 = vadd.f32 -0.6931472, %v967_v7 }
 0x1e1   : > { %v1563_v12 = vpop.eup %1562  ;;  %v894_v13 = vmul.f32 1.442695, %v874_v9  ;;  %v999_v14 = vpack.c.bf16 %v1956_v11, %v1954_v10 }
 0x1e2   : > { %v921_v15 = vadd.f32 1.0, %v1563_v12  ;;  %v810_v16 = vpop.f32.mrf.mxu2  ;;  %v1565_v18 = vpop.eup %1564 }
 0x1e3   : > { %1566 = vpow2.f32 %v894_v13  ;;  %v811_v17 = vadd.f32 %v1947_v36, %v810_v16  ;;  %v939_v20 = vmul.f32 0.6931472, %v1565_v18 }
 0x1e4   : > { %1568 = vlog2.f32 %v921_v15 }
 0x1e5   : > { %v859_v19 = vand.u32 2147483647, %v811_v17  ;;  %v968_v30 = vadd.f32 %v939_v20, %v840_v23  ;;  %v843_v52 = vmax.f32 %v811_v17, 0.0 }
 0x1e7   : > { %v875_v21 = vsub.f32 0.0, %v859_v19  ;;  %v1962_v37 = vadd.f32 -0.6931472, %v968_v30 }
 0x1e9   : > { %v1567_v22 = vpop.eup %1566  ;;  %v896_v24 = vmul.f32 1.442695, %v875_v21 }
 0x1ea   : > { %v1569_v25 = vpop.eup %1568  ;;  %v922_v28 = vadd.f32 1.0, %v1567_v22  ;;  %v813_v29 = vpop.f32.mrf.mxu2 }
 0x1eb   : > { %v941_v31 = vmul.f32 0.6931472, %v1569_v25  ;;  %1570 = vpow2.f32 %v896_v24  ;;  %v814_v32 = vadd.f32 %v1947_v36, %v813_v29 }
 0x1ec   : > { %1572 = vlog2.f32 %v922_v28 }
 0x1ed   : > { %v969_v33 = vadd.f32 %v941_v31, %v841_v27  ;;  %v860_v34 = vand.u32 2147483647, %v814_v32  ;;  %v844_v12 = vmax.f32 %v814_v32, 0.0 }
 0x1ef   : > { %v876_v35 = vsub.f32 0.0, %v860_v34  ;;  %v1964_v38 = vadd.f32 -0.6931472, %v969_v33 }
 0x1f1   : > { %v1571_v39 = vpop.eup %1570  ;;  %v898_v40 = vmul.f32 1.442695, %v876_v35  ;;  %v1000_v41 = vpack.c.bf16 %v1964_v38, %v1962_v37  ;;  %v1008_v37 = vstv %s1007_s30 }
 0x1f2   : > { %v923_v26 = vadd.f32 1.0, %v1571_v39  ;;  %v815_v42 = vpop.f32.mrf.mxu2  ;;  %v1573_v44 = vpop.eup %1572 }
 0x1f3   : > { %1574 = vpow2.f32 %v898_v40  ;;  %v816_v43 = vadd.f32 %v1947_v36, %v815_v42  ;;  %v943_v46 = vmul.f32 0.6931472, %v1573_v44 }
 0x1f4   : > { %1576 = vlog2.f32 %v923_v26 }
 0x1f5   : > { %v861_v45 = vand.u32 2147483647, %v816_v43  ;;  %v970_v55 = vadd.f32 %v943_v46, %v842_v49  ;;  %v845_v19 = vmax.f32 %v816_v43, 0.0 }
 0x1f7   : > { %v877_v47 = vsub.f32 0.0, %v861_v45  ;;  %v1970_v61 = vadd.f32 -0.6931472, %v970_v55 }
 0x1f9   : > { %v1575_v48 = vpop.eup %1574  ;;  %v900_v50 = vmul.f32 1.442695, %v877_v47 }
 0x1fa   : > { %v1577_v51 = vpop.eup %1576  ;;  %v924_v53 = vadd.f32 1.0, %v1575_v48  ;;  %v818_v54 = vpop.f32.mrf.mxu2 }
 0x1fb   : > { %v945_v56 = vmul.f32 0.6931472, %v1577_v51  ;;  %1578 = vpow2.f32 %v900_v50  ;;  %v819_v57 = vadd.f32 %v1947_v36, %v818_v54 }
 0x1fc   : > { %1580 = vlog2.f32 %v924_v53 }
 0x1fd   : > { %v971_v58 = vadd.f32 %v945_v56, %v843_v52  ;;  %v862_v59 = vand.u32 2147483647, %v819_v57  ;;  %v846_v31 = vmax.f32 %v819_v57, 0.0 }
 0x1ff   : > { %v878_v60 = vsub.f32 0.0, %v862_v59  ;;  %v1972_v62 = vadd.f32 -0.6931472, %v971_v58 }
 0x201   : > { %v1579_v63 = vpop.eup %1578  ;;  %v902_v0 = vmul.f32 1.442695, %v878_v60  ;;  %v1001_v1 = vpack.c.bf16 %v1972_v62, %v1970_v61 }
 0x202   : > { %v925_v2 = vadd.f32 1.0, %v1579_v63  ;;  %v820_v3 = vpop.f32.mrf.mxu2  ;;  %v1581_v5 = vpop.eup %1580 }
 0x203   : > { %1582 = vpow2.f32 %v902_v0  ;;  %v821_v4 = vadd.f32 %v1947_v36, %v820_v3  ;;  %v947_v7 = vmul.f32 0.6931472, %v1581_v5 }
 0x204   : > { %1584 = vlog2.f32 %v925_v2 }
 0x205   : > { %v863_v6 = vand.u32 2147483647, %v821_v4  ;;  %v972_v18 = vadd.f32 %v947_v7, %v844_v12  ;;  %v847_v35 = vmax.f32 %v821_v4, 0.0 }
 0x207   : > { %v879_v8 = vsub.f32 0.0, %v863_v6  ;;  %v1977_v22 = vadd.f32 -0.6931472, %v972_v18 }
 0x209   : > { %v1583_v9 = vpop.eup %1582  ;;  %v904_v13 = vmul.f32 1.442695, %v879_v8 }
 0x20a   : > { %v1585_v15 = vpop.eup %1584  ;;  %v926_v16 = vadd.f32 1.0, %v1583_v9  ;;  %v823_v17 = vpop.f32.mrf.mxu2 }
 0x20b   : > { %v949_v20 = vmul.f32 0.6931472, %v1585_v15  ;;  %1586 = vpow2.f32 %v904_v13  ;;  %v2002_v55 = vadd.f32 %v1947_v36, %v823_v17 }
 0x20c   : > { %1588 = vlog2.f32 %v926_v16 }
 0x20d   : > { %v973_v21 = vadd.f32 %v949_v20, %v845_v19  ;;  %v864_v0 = vand.u32 2147483647, %v2002_v55 }
 0x20f   : > { %v1979_v23 = vadd.f32 -0.6931472, %v973_v21  ;;  %v880_v5 = vsub.f32 0.0, %v864_v0 }
 0x211   : > { %v1587_v24 = vpop.eup %1586  ;;  %v1002_v25 = vpack.c.bf16 %v1979_v23, %v1977_v22  ;;  %v906_v15 = vmul.f32 1.442695, %v880_v5  ;;  %v1014_v22 = vsel %vm1009_vm4, %v999_v14, 0  ;;  %v998_v23 = vld [vmem:[%s2154_s8] sm:$0x1] }
 0x212   : > { %v927_v27 = vadd.f32 1.0, %v1587_v24  ;;  %v825_v28 = vpop.f32.mrf.mxu2  ;;  %v1589_v29 = vpop.eup %1588 }
 0x213   : > { %v951_v30 = vmul.f32 0.6931472, %v1589_v29  ;;  %v1999_v51 = vadd.f32 %v1947_v36, %v825_v28 }
 0x214   : > { %1590 = vlog2.f32 %v927_v27 }
 0x215   : > { %v974_v34 = vadd.f32 %v951_v30, %v846_v31  ;;  %v865_v57 = vand.u32 2147483647, %v1999_v51 }
 0x217   : > { %v1983_v26 = vadd.f32 -0.6931472, %v974_v34  ;;  %v881_v3 = vsub.f32 0.0, %v865_v57 }
 0x219   : > { %v908_v8 = vmul.f32 1.442695, %v881_v3  ;;  %v848_v3 = vmax.f32 %v2002_v55, 0.0  ;;  %v1023_v55 = vsel %vm1009_vm4, %v1002_v25, 0 }
 0x21a   : > { %v1591_v32 = vpop.eup %1590  ;;  %v828_v33 = vpop.f32.mrf.mxu2 }
 0x21b   : > { %v953_v39 = vmul.f32 0.6931472, %v1591_v32  ;;  %v1993_v46 = vadd.f32 %v1947_v36, %v828_v33 }
 0x21d   : > { %v975_v40 = vadd.f32 %v953_v39, %v847_v35  ;;  %v866_v48 = vand.u32 2147483647, %v1993_v46 }
 0x21f   : > { %v1985_v42 = vadd.f32 -0.6931472, %v975_v40  ;;  %v882_v54 = vsub.f32 0.0, %v866_v48 }
 0x221   : > { %v1003_v43 = vpack.c.bf16 %v1985_v42, %v1983_v26  ;;  %v910_v60 = vmul.f32 1.442695, %v882_v54  ;;  %v1017_v26 = vsel %vm1009_vm4, %v1000_v41, 0  ;;  %v1050_v41 = vld [vmem:[%s423_s16] sm:$0x1] }
 0x222   : > { %v830_v44 = vpop.f32.mrf.mxu2 }
 0x223   : > { %v1990_v45 = vadd.f32 %v1947_v36, %v830_v44 }
 0x225   : > { %v867_v47 = vand.u32 2147483647, %v1990_v45 }
 0x227   : > { %v883_v52 = vsub.f32 0.0, %v867_v47  ;;  %v851_v47 = vmax.f32 %v1990_v45, 0.0 }
 0x229   : > { %v912_v58 = vmul.f32 1.442695, %v883_v52 }
 0x22a   : > { %v833_v49 = vpop.f32.mrf.mxu2 }
 0x22b   : > { %v834_v50 = vadd.f32 %v1947_v36, %v833_v49  ;;  %v850_v49 = vmax.f32 %v1993_v46, 0.0 }
 0x22d   : > { %v868_v53 = vand.u32 2147483647, %v834_v50  ;;  %v852_v32 = vmax.f32 %v834_v50, 0.0 }
 0x22f   : > { %v884_v56 = vsub.f32 0.0, %v868_v53 }
 0x231   : > { %v914_v59 = vmul.f32 1.442695, %v884_v56 }
 0x232   : > { %v835_v63 = vpop.f32.mrf.mxu2 }
 0x233   : > { %1592 = vpow2.f32 %v914_v59  ;;  %v836_v2 = vadd.f32 %v1947_v36, %v835_v63 }
 0x234   : > { %1594 = vpow2.f32 %v912_v58 }
 0x235   : > { %v869_v4 = vand.u32 2147483647, %v836_v2  ;;  %1596 = vpow2.f32 %v910_v60  ;;  %v853_v35 = vmax.f32 %v836_v2, 0.0  ;;  %v849_v2 = vmax.f32 %v1999_v51, 0.0 }
 0x236   : > { %v1026_v51 = vsel %vm1009_vm4, %v1003_v43, 0 }
 0x237   : > { %v885_v6 = vsub.f32 0.0, %v869_v4 }
 0x239   : > { %v1593_v7 = vpop.eup %1592  ;;  %v916_v9 = vmul.f32 1.442695, %v885_v6 }
 0x23a   : > { %v932_v12 = vadd.f32 1.0, %v1593_v7  ;;  %v1595_v13 = vpop.eup %1594 }
 0x23b   : > { %1598 = vpow2.f32 %v916_v9  ;;  %v1597_v16 = vpop.eup %1596  ;;  %v931_v17 = vadd.f32 1.0, %v1595_v13  ;;  %v1020_v13 = vsel %vm1009_vm4, %v1001_v1, 0 }
 0x23c   : > { %1600 = vpow2.f32 %v908_v8  ;;  %v930_v18 = vadd.f32 1.0, %v1597_v16 }
 0x23d   : > { %1602 = vlog2.f32 %v932_v12 }
 0x23e   : > { %1604 = vpow2.f32 %v906_v15 }
 0x23f   : > { %1606 = vlog2.f32 %v931_v17 }
 0x240   : > { %1608 = vlog2.f32 %v930_v18 }
 0x241   : > { %v1599_v36 = vpop.eup %1598 }
 0x242   : > { %v933_v19 = vadd.f32 1.0, %v1599_v36  ;;  %v1601_v20 = vpop.eup %1600 }
 0x243   : > { %v1603_v21 = vpop.eup %1602  ;;  %v929_v27 = vadd.f32 1.0, %v1601_v20 }
 0x244   : > { %1610 = vlog2.f32 %v933_v19  ;;  %v1605_v24 = vpop.eup %1604  ;;  %v963_v28 = vmul.f32 0.6931472, %v1603_v21 }
 0x245   : > { %v1607_v29 = vpop.eup %1606  ;;  %v928_v30 = vadd.f32 1.0, %v1605_v24  ;;  %1612 = vlog2.f32 %v929_v27 }
 0x246   : > { %v1609_v31 = vpop.eup %1608  ;;  %v961_v34 = vmul.f32 0.6931472, %v1607_v29  ;;  %v980_v40 = vadd.f32 %v963_v28, %v852_v32 }
 0x247   : > { %1614 = vlog2.f32 %v928_v30  ;;  %v959_v44 = vmul.f32 0.6931472, %v1609_v31 }
 0x248   : > { %v979_v52 = vadd.f32 %v961_v34, %v851_v47  ;;  %v1432_v53 = vadd.f32 -0.6931472, %v980_v40 }
 0x249   : > { %v978_v57 = vadd.f32 %v959_v44, %v850_v49 }
 0x24a   : > { %v1611_v33 = vpop.eup %1610  ;;  %v1431_v63 = vadd.f32 -0.6931472, %v979_v52 }
 0x24b   : > { %v965_v39 = vmul.f32 0.6931472, %v1611_v33  ;;  %v1613_v56 = vpop.eup %1612  ;;  %v1430_v45 = vadd.f32 -0.6931472, %v978_v57 }
 0x24c   : > { %v957_v59 = vmul.f32 0.6931472, %v1613_v56 }
 0x24d   : > { %v981_v48 = vadd.f32 %v965_v39, %v853_v35  ;;  %v1615_v50 = vpop.eup %1614  ;;  %v1005_v4 = vpack.c.bf16 %v1431_v63, %v1430_v45 }
 0x24e   : > { %v955_v0 = vmul.f32 0.6931472, %v1615_v50  ;;  %v977_v46 = vadd.f32 %v957_v59, %v849_v2 }
 0x24f   : > { %v1433_v54 = vadd.f32 -0.6931472, %v981_v48  ;;  %v1032_v6 = vsel %vm1009_vm4, %v1005_v4, 0 }
 0x250   : > { %v976_v5 = vadd.f32 %v955_v0, %v848_v3  ;;  %v1429_v7 = vadd.f32 -0.6931472, %v977_v46 }
 0x251   : > { %v1006_v58 = vpack.c.bf16 %v1433_v54, %v1432_v53 }
 0x252   : > { %v1428_v8 = vadd.f32 -0.6931472, %v976_v5 }
 0x253   : > { %v1035_v60 = vsel %vm1009_vm4, %v1006_v58, 0 }
 0x254   : > { %1037 = vmatpush.bf16.xpose.msra.mxu3 %v1035_v60  ;;  %v1004_v9 = vpack.c.bf16 %v1429_v7, %v1428_v8 }
 0x256   : > { %v1029_v12 = vsel %vm1009_vm4, %v1004_v9, 0 }
 0x25c   : > { %1038 = vmatpush.bf16.xpose.msra.mxu3 %v1032_v6 }
 0x264   : > { %1039 = vmatpush.bf16.xpose.msra.mxu3 %v1029_v12 }
 0x26c   : > { %1040 = vmatpush.bf16.xpose.msra.mxu3 %v1026_v51 }
 0x274   : > { %1041 = vmatpush.bf16.xpose.msra.mxu3 %v1023_v55 }
 0x27c   : > { %1042 = vmatpush.bf16.xpose.msra.mxu3 %v1020_v13 }
 0x284   : > { %1043 = vmatpush.bf16.xpose.msra.mxu3 %v1017_v26 }
 0x28c   : > { %1044 = vmatpush.bf16.xpose.msra.mxu3 %v1014_v22 }
 0x293   : > { %1434 = vmatmul.msk.bf16.vlgmr.msra.gmra.mxu3 %vm1009_vm4, %v998_v23 }
 0x316   : > { %v1046_v38 = vpop.f32.mrf.mxu3 }
 0x317   : > { %v1047_v10 = vadd.f32 %v1046_v38, %v1008_v37 }
 0x319   : > { %v1051_v11 = vmul.f32 %v1050_v41, %v1047_v10 }
 0x31a   : > { %1062 = sbr.rel (!%p1792_p4) target bundleno = 847 (0x34f), region = 64 }
 0x31b   : > { %1052 = vst [vmem:[%s431_s21] sm:$0x1] %v1051_v11 }
 0x31e   : > { %v1048_v14 = vpop.f32.mrf.mxu3 }
 0x31f   : > { %s2168_s23 = smov (!%p1065_p9, %s1064_s23), 16 }
 0x320   : > { %s1437_s30 = sshll.u32 %s2168_s23, 2 }
 0x321   : > { %p1440_p10 = scmp.eq.s32.totalorder %s1437_s30, 0 }
 0x322   : > { %s2059_s13 = sshrl.u32 (!%p1440_p10), %s2168_s23, 4 }
 0x323   : > { %1073 = sbr.rel (%p1440_p10) target bundleno = 847 (0x34f), region = 68  ;;  %p1441_p11 = scmp.le.s32.totalorder (!%p1440_p10), %s2059_s13, 0 }
 0x328   : > { %1304 = sbr.rel (%p1441_p11) target bundleno = 830 (0x33e), region = 155  ;;  %s2159_s9 = smov (!%p1441_p11), %s2053_s29 }
 0x329   : > { %s2160_s26 = smov (!%p1441_p11), %s1887_s24  ;;  %s2068_s12 = smov (!%p1441_p11), 0  }
 0x32a   : > { %s2070_s14 = smov (!%p1441_p11), 0  }
 0x32d LB: >> { %v1090_v61 = vld [vmem:[%s1678_s26] sm:$0xf]  ;;  %v1092_v62 = vld [vmem:[%s1678_s26 + $0x4] sm:$0xf]  ;;  %v1094_v1 = vld [vmem:[%s1678_s26 + $0x8] sm:$0xf]  ;;  %s1686_s14 = sphi %s2070_s14, %s1084_s14   ;;  %s1682_s12 = sphi %s2068_s12, %s2163_s12   ;;  %s1678_s26 = sphi %s2160_s26, %s2162_s26   ;;  %s1674_s9 = sphi %s2159_s9, %s2161_s9  }
 0x32e   : >> { %1091 = vst [vmem:[%s1674_s9] sm:$0xf] %v1090_v61  ;;  %v1096_v25 = vld [vmem:[%s1678_s26 + $0xc] sm:$0xf]  ;;  %s1122_s15 = sadd.s32 1, %s1682_s12  ;;  %v1098_v42 = vld [vmem:[%s1678_s26 + $0x10] sm:$0xf] }
 0x32f   : >> { %1093 = vst [vmem:[%s1674_s9 + $0x4] sm:$0xf] %v1092_v62  ;;  %v1100_v43 = vld [vmem:[%s1678_s26 + $0x14] sm:$0xf]  ;;  %p1123_p12 = scmp.ge.s32.totalorder %s1122_s15, %s2059_s13  ;;  %v1102_v15 = vld [vmem:[%s1678_s26 + $0x18] sm:$0xf] }
 0x330   : >> { %1095 = vst [vmem:[%s1674_s9 + $0x8] sm:$0xf] %v1094_v1  ;;  %v1104_v16 = vld [vmem:[%s1678_s26 + $0x1c] sm:$0xf]  ;;  %v1106_v17 = vld [vmem:[%s1678_s26 + $0x20] sm:$0xf] }
 0x331   : >> { %1097 = vst [vmem:[%s1674_s9 + $0xc] sm:$0xf] %v1096_v25  ;;  %v1108_v18 = vld [vmem:[%s1678_s26 + $0x24] sm:$0xf]  ;;  %s2170_s15 = smov (%p1123_p12, %s1122_s15), 0  ;;  %s1084_s14 = sadd.s32 1, %s1686_s14  }
 0x332   : >> { %1099 = vst [vmem:[%s1674_s9 + $0x10] sm:$0xf] %v1098_v42  ;;  %v1110_v36 = vld [vmem:[%s1678_s26 + $0x28] sm:$0xf]  ;;  %v1112_v19 = vld [vmem:[%s1678_s26 + $0x2c] sm:$0xf]  ;;  %p1083_p13 = scmp.ge.s32.totalorder %s1084_s14, %s2059_s13  ;;  %s2163_s12 = smov %s2170_s15 }
 0x333   : >> { %1101 = vst [vmem:[%s1674_s9 + $0x14] sm:$0xf] %v1100_v43  ;;  %s1442_s16 = sshll.u32 %s2170_s15, 6  ;;  %v1114_v20 = vld [vmem:[%s1678_s26 + $0x30] sm:$0xf] }
 0x334   : >> { %1103 = vst [vmem:[%s1674_s9 + $0x18] sm:$0xf] %v1102_v15  ;;  %s1127_s17 = scalar_lea.vmem %s1887_s24, %s1442_s16 [#allocation3]   ;;  %s1128_s18 = scalar_lea.vmem %s2053_s29, %s1442_s16   ;;  %v1116_v21 = vld [vmem:[%s1678_s26 + $0x34] sm:$0xf]  ;;  %v1118_v24 = vld [vmem:[%s1678_s26 + $0x38] sm:$0xf] }
 0x335   : >> { %1105 = vst [vmem:[%s1674_s9 + $0x1c] sm:$0xf] %v1104_v16  ;;  %v1120_v27 = vld [vmem:[%s1678_s26 + $0x3c] sm:$0xf]  ;;  %s2162_s26 = smov %s1127_s17 }
 0x336   : >> { %1107 = vst [vmem:[%s1674_s9 + $0x20] sm:$0xf] %v1106_v17 }
 0x337   : >> { %1109 = vst [vmem:[%s1674_s9 + $0x24] sm:$0xf] %v1108_v18 }
 0x338   : >> { %1111 = vst [vmem:[%s1674_s9 + $0x28] sm:$0xf] %v1110_v36 }
 0x339   : >> { %1113 = vst [vmem:[%s1674_s9 + $0x2c] sm:$0xf] %v1112_v19  ;;  %1086 = sbr.rel (!%p1083_p13) target bundleno = 813 (0x32d), region = 161 }
 0x33a   : >> { %1115 = vst [vmem:[%s1674_s9 + $0x30] sm:$0xf] %v1114_v20 }
 0x33b   : >> { %1117 = vst [vmem:[%s1674_s9 + $0x34] sm:$0xf] %v1116_v21 }
 0x33c   : >> { %1119 = vst [vmem:[%s1674_s9 + $0x38] sm:$0xf] %v1118_v24 }
 0x33d   : >> { %1121 = vst [vmem:[%s1674_s9 + $0x3c] sm:$0xf] %v1120_v27  ;;  %s2161_s9 = smov %s1128_s18 }
 0x33e PF: > { %s2128_s21 = sand.u32 15, %s2168_s23   ;;  %s1459_s19 = sshll.u32 %s2059_s13, 6 }
 0x33f   : > { %s1133_s27 = scalar_lea.vmem %s1887_s24, %s1459_s19 [#allocation3]   ;;  %s1135_s28 = scalar_lea.vmem %s2053_s29, %s1459_s19  }
 0x340   : > { %p1447_p0 = scmp.le.s32.totalorder %s2128_s21, 0 }
 0x341   : > { %s1688_s30 = smov (!%p1447_p0), %s1135_s28   ;;  %s1692_s16 = smov (!%p1447_p0), %s1133_s27  }
 0x342   : > { %1318 = sbr.rel (%p1447_p0) target bundleno = 847 (0x34f), region = 166  ;;  %s1696_s17 = smov (!%p1447_p0), 0  }
 0x343   : > { %s1700_s15 = smov (!%p1447_p0), 0  }
 0x347 LB: >> { %v1145_v28 = vld [vmem:[%s1694_s16] sm:$0xf]  ;;  %s1147_s23 = sadd.s32 1, %s1698_s17  ;;  %s1139_s15 = sadd.s32 1, %s1702_s15   ;;  %s1702_s15 = sphi %s1700_s15, %s1139_s15   ;;  %s1698_s17 = sphi %s1696_s17, %s1697_s17   ;;  %s1694_s16 = sphi %s1692_s16, %s1152_s16   ;;  %s1690_s30 = sphi %s1688_s30, %s1153_s30  }
 0x348   : >> { %1146 = vst [vmem:[%s1690_s30] sm:$0xf] %v1145_v28  ;;  %p1148_p1 = scmp.ge.s32.totalorder %s1147_s23, %s2128_s21  ;;  %p1138_p2 = scmp.ge.s32.totalorder %s1139_s15, %s2128_s21 }
 0x34a   : >> { %s2172_s23 = smov (%p1148_p1, %s1147_s23), 0  ;;  %1141 = sbr.rel (!%p1138_p2) target bundleno = 839 (0x347), region = 172 }
 0x34b   : >> { %s1448_s24 = sshll.u32 %s2172_s23, 2  ;;  %s1697_s17 = smov %s2172_s23  }
 0x34c   : >> { %s1152_s16 = scalar_lea.vmem %s1133_s27, %s1448_s24 [#allocation3]   ;;  %s1153_s30 = scalar_lea.vmem %s1135_s28, %s1448_s24  }
 0x34f PF: > { %p20_p3 = scmp.ge.s32.totalorder %s1782_s22, 5   ;;  %s2164_s19 = smov %s1666_s20 }
 0x350   : > { %s2165_s20 = smov %s1790_s25  ;;  %s2166_s21 = smov %s1782_s22 }
 0x351   :  { %22 = sbr.rel (!%p20_p3) target bundleno = 4 (0x4), region = 183 }

</bundles_post_ra>
